<compile_context>
chip_gen: v7x
topology: tpu7x:2x2x1
jax: 0.10.0
libtpu: 0.0.40
codegen_flags: <defaults>
</compile_context>

<pallas_src>
import functools

import jax
import jax.numpy as jnp
from jax import lax
from jax.experimental import pallas as pl
from jax.experimental.pallas import tpu as pltpu


def _round_up(x: int, m: int) -> int:
    return ((x + m - 1) // m) * m


def _pix_onehot_gather_kernel(idx_ref, px_ref, out_ref, acc_ref):
    """One grid step = (pair block b, atom tile a).

    idx_ref : VMEM (TP, 1)        int32  pair_j rows of this pair block
    px_ref  : VMEM (TA, FEAT_PAD)        atom tile `a` of the padded features
    out_ref : VMEM (TP, FEAT_PAD)        output block of pair block `b`
    acc_ref : VMEM (TP, FEAT_PAD) f32    accumulator (resident across atom tiles)
    """
    a = pl.program_id(1)
    ta = px_ref.shape[0]
    tp = out_ref.shape[0]

    @pl.when(a == 0)
    def _():
        acc_ref[...] = jnp.zeros_like(acc_ref)

    # One-hot selection matrix for this atom tile: row p has a single 1.0 at
    # column (pair_j[p] - a*TA) iff pair_j[p] falls inside this tile, else 0.
    global_ids = lax.broadcasted_iota(jnp.int32, (tp, ta), 1) + a * ta
    onehot = (global_ids == idx_ref[...]).astype(px_ref.dtype)      # (TP, TA)

    # Gather as an MXU matmul; exact (one 1.0 per row, zeros elsewhere).
    acc_ref[...] += jnp.dot(onehot, px_ref[...],
                            preferred_element_type=jnp.float32)

    @pl.when(a == pl.num_programs(1) - 1)
    def _():
        out_ref[...] = acc_ref[...].astype(out_ref.dtype)


def pix_layer_forward(px, pair_i, pair_j, w=None, *, tp=512, ta=1024):
    """Pallas implementation of PIXLayer.forward (== px[pair_j]).

    `pair_i` and `w` (the nn.Linear weight) are accepted for parity with the
    PyTorch module but are not used by forward, exactly like the reference.
    """
    del pair_i, w  # unused in forward (matches PyTorch)

    n_atoms, x_dim, n_ch = px.shape
    n_pairs = int(pair_j.shape[0])
    if n_pairs == 0:  # empty-grid guard
        return jnp.zeros((0, x_dim, n_ch), dtype=px.dtype)

    feat = x_dim * n_ch
    feat_pad = _round_up(feat, 128)                 # lane-dense stores / MXU width

    # --- atoms (contraction) axis: tile and pad to a multiple of the tile ---
    ta_eff = min(ta, _round_up(n_atoms, 8))
    n_atoms_pad = _round_up(n_atoms, ta_eff)
    n_atom_blocks = n_atoms_pad // ta_eff

    px_flat = px.reshape(n_atoms, feat)
    px_flat = jnp.pad(px_flat,
                      ((0, n_atoms_pad - n_atoms), (0, feat_pad - feat)))

    # --- pairs (output rows) axis: TP rows per grid step, padded ---
    tp_eff = min(tp, _round_up(n_pairs, 8))
    n_pair_blocks = pl.cdiv(n_pairs, tp_eff)
    n_pairs_pad = n_pair_blocks * tp_eff

    # Clamp defensively (an OOB index would silently select zeros rather than
    # raising like PyTorch); padded tail rows gather atom 0 and are sliced off.
    idx = jnp.clip(pair_j.astype(jnp.int32), 0, n_atoms - 1)
    idx = jnp.pad(idx, (0, n_pairs_pad - n_pairs))
    idx = idx.reshape(n_pairs_pad, 1)               # column layout for the kernel

    itemsize = jnp.dtype(px.dtype).itemsize
    vmem_bytes = (
        2 * ta_eff * feat_pad * itemsize            # px tiles (double-buffered)
        + 2 * tp_eff * feat_pad * itemsize          # output blocks
        + tp_eff * feat_pad * 4                     # f32 accumulator scratch
        + 2 * _round_up(tp_eff, 8) * 128 * 4        # idx blocks (lane-padded)
    )
    # Explicit limit: v5e default scoped limit is 16 MiB, v7x physical is 64 MiB.
    vmem_limit = int(min(max(2 * vmem_bytes, 32 * 1024 * 1024), 64 * 1024 * 1024))

    cost = pl.CostEstimate(
        flops=2 * n_pairs_pad * n_atoms_pad * feat_pad,
        transcendentals=0,
        bytes_accessed=int(
            n_pair_blocks * n_atoms_pad * feat_pad * itemsize   # px per pair block
            + n_pairs_pad * feat_pad * itemsize                 # output
            + n_pairs_pad * 4),                                 # indices
    )

    grid_spec = pltpu.PrefetchScalarGridSpec(
        num_scalar_prefetch=0,
        grid=(n_pair_blocks, n_atom_blocks),        # reduction (atoms) axis last
        in_specs=[
            pl.BlockSpec((tp_eff, 1), lambda b, a: (b, 0)),            # pair_j
            pl.BlockSpec((ta_eff, feat_pad), lambda b, a: (a, 0)),     # px tile
        ],
        out_specs=pl.BlockSpec((tp_eff, feat_pad), lambda b, a: (b, 0)),
        scratch_shapes=[pltpu.VMEM((tp_eff, feat_pad), jnp.float32)],
    )

    out_flat = pl.pallas_call(
        _pix_onehot_gather_kernel,
        out_shape=jax.ShapeDtypeStruct((n_pairs_pad, feat_pad), px.dtype),
        grid_spec=grid_spec,
        compiler_params=pltpu.CompilerParams(
            dimension_semantics=("parallel", "arbitrary"),
            vmem_limit_bytes=vmem_limit),
        cost_estimate=cost,
    )(idx, px_flat)

    return out_flat[:n_pairs, :feat].reshape(n_pairs, x_dim, n_ch)


if __name__ == "__main__":
    key = jax.random.PRNGKey(0)
    k_px, k_w, k_i, k_j = jax.random.split(key, 4)

    n_atoms, x_dim, n_ch = 16, 3, 32
    n_pairs = 24

    px = jax.random.normal(k_px, (n_atoms, x_dim, n_ch), dtype=jnp.float32)
    pair_i = jax.random.randint(k_i, (n_pairs,), 0, n_atoms, dtype=jnp.int32)
    pair_j = jax.random.randint(k_j, (n_pairs,), 0, n_atoms, dtype=jnp.int32)

    # Deterministic init of the (unused-in-forward) nn.Linear(n_ch, n_ch, bias=False) weight.
    w = jax.random.normal(k_w, (n_ch, n_ch), dtype=jnp.float32) / jnp.sqrt(n_ch)

    fwd = jax.jit(functools.partial(pix_layer_forward, tp=512, ta=1024))
    out = jax.block_until_ready(fwd(px, pair_i, pair_j, w))

    ref = px[pair_j]
    assert out.shape == (n_pairs, x_dim, n_ch), out.shape
    assert out.dtype == px.dtype, out.dtype
    assert jnp.array_equal(out, ref), "Pallas one-hot gather mismatch vs reference"

    print("KERNEL_OK")
</pallas_src>

<mosaic_0001>
module attributes {stable_mosaic.version = 11 : i64} {
  func.func @_pix_onehot_gather_kernel(%arg0: i32, %arg1: i32, %arg2: memref<24x1xi32, #tpu.memory_space<vmem>>, %arg3: memref<16x128xf32, #tpu.memory_space<vmem>>, %arg4: memref<24x128xf32, #tpu.memory_space<vmem>>, %arg5: memref<24x128xf32, #tpu.memory_space<vmem>>) attributes {dimension_semantics = [#tpu.dimension_semantics<parallel>, #tpu.dimension_semantics<arbitrary>], iteration_bounds = array<i64: 1, 1>, scalar_prefetch = 0 : i64, scratch_operands = 1 : i64, tpu.core_type = #tpu.core_type<tc>, window_params = [{transform_indices = @transform_0, window_bounds = array<i64: 24, 1>}, {transform_indices = @transform_1, window_bounds = array<i64: 16, 128>}, {transform_indices = @transform_2, window_bounds = array<i64: 24, 128>}]} {
    %c0_i32 = arith.constant 0 : i32
    %0 = arith.cmpi eq, %arg1, %c0_i32 : i32
    %1 = arith.extui %0 : i1 to i32
    %c0_i32_0 = arith.constant 0 : i32
    %2 = arith.cmpi ne, %1, %c0_i32_0 : i32
    scf.if %2 {
      %cst_10 = arith.constant 0.000000e+00 : f32
      %20 = vector.broadcast %cst_10 : f32 to vector<24x128xf32>
      %c0_11 = arith.constant 0 : index
      %c0_12 = arith.constant 0 : index
      %21 = vector.load %arg5[%c0_11, %c0_12] : memref<24x128xf32, #tpu.memory_space<vmem>>, vector<24x128xf32>
      tpu.vector_store %arg5[%c0_11, %c0_12], %20 {strides = array<i32>} : memref<24x128xf32, #tpu.memory_space<vmem>>, vector<24x128xf32>,
    } else {
    }
    %3 = tpu.iota {dimensions = array<i32: 1>} : vector<24x16xi32>
    %c16_i32 = arith.constant 16 : i32
    %4 = arith.muli %arg1, %c16_i32 : i32
    %5 = vector.broadcast %4 : i32 to vector<24x16xi32>
    %6 = arith.addi %3, %5 : vector<24x16xi32>
    %c0 = arith.constant 0 : index
    %c0_1 = arith.constant 0 : index
    %7 = vector.load %arg2[%c0, %c0_1] : memref<24x1xi32, #tpu.memory_space<vmem>>, vector<24x1xi32>
    %8 = vector.broadcast %7 : vector<24x1xi32> to vector<24x16xi32>
    %9 = arith.cmpi eq, %6, %8 : vector<24x16xi32>
    %10 = arith.extui %9 : vector<24x16xi1> to vector<24x16xi32>
    %11 = arith.sitofp %10 : vector<24x16xi32> to vector<24x16xf32>
    %c0_2 = arith.constant 0 : index
    %c0_3 = arith.constant 0 : index
    %12 = vector.load %arg5[%c0_2, %c0_3] : memref<24x128xf32, #tpu.memory_space<vmem>>, vector<24x128xf32>
    %c0_4 = arith.constant 0 : index
    %c0_5 = arith.constant 0 : index
    %13 = vector.load %arg3[%c0_4, %c0_5] : memref<16x128xf32, #tpu.memory_space<vmem>>, vector<16x128xf32>
    %cst = arith.constant dense<0.000000e+00> : vector<24x128xf32>
    %14 = tpu.matmul %11, %13, %cst {dimension_numbers = #tpu.dot_dimension_numbers<[1], [0], [0], [1], [0, 0, 1, 1], [], []>} : vector<24x16xf32>, vector<16x128xf32>, vector<24x128xf32> -> vector<24x128xf32>
    %15 = arith.addf %12, %14 : vector<24x128xf32>
    %c0_6 = arith.constant 0 : index
    %c0_7 = arith.constant 0 : index
    %16 = vector.load %arg5[%c0_6, %c0_7] : memref<24x128xf32, #tpu.memory_space<vmem>>, vector<24x128xf32>
    tpu.vector_store %arg5[%c0_6, %c0_7], %15 {strides = array<i32>} : memref<24x128xf32, #tpu.memory_space<vmem>>, vector<24x128xf32>,
    %c0_i32_8 = arith.constant 0 : i32
    %17 = arith.cmpi eq, %arg1, %c0_i32_8 : i32
    %18 = arith.extui %17 : i1 to i32
    %c0_i32_9 = arith.constant 0 : i32
    %19 = arith.cmpi ne, %18, %c0_i32_9 : i32
    scf.if %19 {
      %c0_10 = arith.constant 0 : index
      %c0_11 = arith.constant 0 : index
      %20 = vector.load %arg5[%c0_10, %c0_11] : memref<24x128xf32, #tpu.memory_space<vmem>>, vector<24x128xf32>
      %c0_12 = arith.constant 0 : index
      %c0_13 = arith.constant 0 : index
      %21 = vector.load %arg4[%c0_12, %c0_13] : memref<24x128xf32, #tpu.memory_space<vmem>>, vector<24x128xf32>
      tpu.vector_store %arg4[%c0_12, %c0_13], %20 {strides = array<i32>} : memref<24x128xf32, #tpu.memory_space<vmem>>, vector<24x128xf32>,
    } else {
    }
    return
  }
  func.func @transform_0(%arg0: i32, %arg1: i32) -> (i32, i32) {
    %c0_i32 = arith.constant 0 : i32
    %c0_i32_0 = arith.constant 0 : i32
    return %arg0, %c0_i32 : i32, i32
  }
  func.func @transform_1(%arg0: i32, %arg1: i32) -> (i32, i32) {
    %c0_i32 = arith.constant 0 : i32
    %c0_i32_0 = arith.constant 0 : i32
    return %arg1, %c0_i32 : i32, i32
  }
  func.func @transform_2(%arg0: i32, %arg1: i32) -> (i32, i32) {
    %c0_i32 = arith.constant 0 : i32
    %c0_i32_0 = arith.constant 0 : i32
    return %arg0, %c0_i32 : i32, i32
  }
}

</mosaic_0001>

<bundles_post_ra>
// kernel: pix_layer_forward.1
= control target key start
LH: loop header
LB: loop body
LE: loop exit
PB: predicated region body
PF: predicated region fallthrough
CT: control target
= control target key end

     0   :  { %v193_v0 = vmov 0   ;;  %v194_v6 = vmov 0.0|0.0   ;;  %vm195_vm0 = vmmov 0   ;;  %v196_v8 = vmov 0.0   ;;  %s239_s0 = inlined_call_operand.vmem [shape: s32[24,1], index: 0, kind: input, shape index: {}]   ;;  %s240_s1 = inlined_call_operand.vmem [shape: f32[16,128], index: 1, kind: input, shape index: {}]   ;;  %s241_s2 = inlined_call_operand.vmem [shape: f32[24,128], index: 2, kind: output, shape index: {}]  }
   0x1   :  { %191 = vset.pattern.permute.xlu0 %v193_v0  ;;  %v24_v1 = vld [vmem:[%s239_s0 + $0x8] sm:$0xff]  ;;  %192 = vset.pattern.permute.xlu1 %v193_v0  ;;  %v25_v2 = vld [vmem:[%s239_s0 + $0x10] sm:$0xff]  ;;  %v47_v3 = vld [vmem:[%s240_s1] sm:$0xff]  ;;  %v18_v9 = vlaneseq  ;;  %vm49_vm1 = vcmask 130048  }
   0x2   :  { %30 = vperm.xlu0 %191, %v24_v1   ;;  %33 = vperm.xlu1 %192, %v25_v2   ;;  %v48_v4 = vld [vmem:[%s240_s1 + $0x8] sm:$0xff]  ;;  %v23_v5 = vld [vmem:[%s239_s0] sm:$0xff] }
   0x3   :  { %185 = vmatprep.subr.bf16.mxu1 %v194_v6  ;;  %v183_v7 = vpack.c.bf16 %v48_v4, %v47_v3  ;;  %176 = vmatprep.mubr.msk.f32.mxu1 %vm195_vm0, %v196_v8  ;;  %v19_v10 = vand.u32 127, %v18_v9 }
   0x4   :  { %182 = vmatprep.subr.bf16.mxu0 %v194_v6  ;;  %173 = vmatprep.mubr.msk.f32.mxu0 %vm195_vm0, %v196_v8 }
   0x5   :  { %186 = vmatpush3.bf16.msra.mxu1 %v183_v7  ;;  %184 = vmatpush3.bf16.msra.mxu0 %v183_v7 }
   0x6   :  { %27 = vperm.xlu0 %191, %v23_v5  }
  0x81   :  { %v31_v11 = vpop.permute.xlu0 %30  ;;  %v34_v12 = vpop.permute.xlu1 %33 }
  0x82   :  { %vm36_vm2 = vcmp.eq.s32.totalorder %v19_v10, %v31_v11  ;;  %vm37_vm3 = vcmp.eq.s32.totalorder %v19_v10, %v34_v12 }
  0x83   :  { %v159_v13 = vsel %vm36_vm2, 1.0, %v196_v8  ;;  %v160_v14 = vsel %vm37_vm3, 1.0, %v196_v8 }
  0x84   :  { %177 = vmatmul.mubr.msk.f32.vlgmr.msra.gmra.mrb[0].mxu1 %vm49_vm1, %v159_v13 }
  0x85   :  { %v28_v15 = vpop.permute.xlu0 %27  ;;  %179 = vmatprep.mubr.msk.f32.mxu1 %vm195_vm0, %v196_v8 }
  0x86   :  { %vm35_vm4 = vcmp.eq.s32.totalorder %v19_v10, %v28_v15 }
  0x87   :  { %v158_v16 = vsel %vm35_vm4, 1.0, %v196_v8 }
  0x88   :  { %174 = vmatmul.mubr.msk.f32.vlgmr.msra.gmra.mrb[0].mxu0 %vm49_vm1, %v158_v16  ;;  %180 = vmatmul.mubr.msk.f32.gmra.mrb[2].mxu1 %vm49_vm1, %v160_v14 }
 0x157   :  { %v130_v17 = vpop.f32.mrb[0].mxu1 }
 0x158   :  { %152 = vst [vmem:[%s241_s2 + $0x8] sm:$0xff] %v130_v17  ;;  %v178_v18 = vpop.f32.mrb[1].mxu1 }
 0x15b   :  { %v125_v19 = vpop.f32.mrb[0].mxu0  ;;  %v135_v20 = vpop.f32.mrb[2].mxu1 }
 0x15c   :  { %151 = vst [vmem:[%s241_s2] sm:$0xff] %v125_v19  ;;  %153 = vst [vmem:[%s241_s2 + $0x10] sm:$0xff] %v135_v20  ;;  %v175_v21 = vpop.f32.mrb[1].mxu0  ;;  %v181_v22 = vpop.f32.mrb[3].mxu1 }

</bundles_post_ra>
